<compile_context>
chip_gen: v7x
topology: tpu7x:2x2x1
jax: 0.10.0
libtpu: 0.0.40
codegen_flags: <defaults>
</compile_context>

<pallas_src>
import jax
import jax.numpy as jnp
from jax.experimental import pallas as pl
from jax.experimental.pallas import tpu as pltpu


_ROW_ALIGN = 32  # uint8 sublane packing is (32, 128); also satisfies f32's 8.


def _vmem_limit_bytes():
    """Generation-aware VMEM limit: ~3/4 of physical, capped at 96 MiB."""
    try:
        cap = pltpu.get_tpu_info().vmem_capacity_bytes
    except Exception:
        cap = 64 * 1024 * 1024  # assume the smallest (v7x per-TensorCore)
    return max(16 * 1024 * 1024, min(int(cap) * 3 // 4, 96 * 1024 * 1024))


def _row_tile(n, bytes_per_row, vmem_limit):
    """Largest 32-aligned row tile whose (double-buffered + temporaries)
    working set stays within ~half the VMEM limit; keeps >= 2 grid steps for
    megacore sharding whenever the table is big enough."""
    budget = vmem_limit // 2
    t = max(_ROW_ALIGN, budget // max(1, bytes_per_row))
    if t >= n:
        if n >= 2 * _ROW_ALIGN:
            # Whole table fits; still split into two blocks so both v7x
            # TensorCores get work and per-step overhead stays hidden.
            half = (n + 1) // 2
            t = ((half + _ROW_ALIGN - 1) // _ROW_ALIGN) * _ROW_ALIGN
        else:
            t = n  # tiny table: one block, block dim == full array dim
    else:
        t = (t // _ROW_ALIGN) * _ROW_ALIGN
    return t


# ----------------------------------------------------------------------------
# Pallas kernels
# ----------------------------------------------------------------------------
def _prepack_kernel(w_ref, q_ref, sb_ref):
    """Per-row affine quantize float32 -> uint8 (embedding_bag_prepack).

    Outputs: q (TN, D) uint8, sb (TN, 2) float32 with sb[:,0]=scale, sb[:,1]=bias.
    """
    w = w_ref[...]                                   # (TN, D) float32
    w_min = jnp.min(w, axis=-1, keepdims=True)       # (TN, 1)
    w_max = jnp.max(w, axis=-1, keepdims=True)       # (TN, 1)
    rng = w_max - w_min
    scale = rng * (1.0 / 255.0)                      # stored as-is (0 for constant rows)
    inv_scale = 255.0 / (rng + 1e-8)                 # fbgemm-style epsilon guard
    q = jnp.clip(jnp.round((w - w_min) * inv_scale), 0.0, 255.0)
    q_ref[...] = q.astype(jnp.uint8)
    # Direct column stores (no lane-axis concatenate).
    sb_ref[:, 0:1] = scale
    sb_ref[:, 1:2] = w_min


def _unpack_kernel(q_ref, sb_ref, w_ref):
    """Dequantize uint8 -> float32 (embedding_bag_unpack)."""
    q = q_ref[...].astype(jnp.float32)               # (TN, D)
    scale = sb_ref[:, 0:1]                           # (TN, 1)
    bias = sb_ref[:, 1:2]                            # (TN, 1)
    w_ref[...] = q * scale + bias


# ----------------------------------------------------------------------------
# Wrappers
# ----------------------------------------------------------------------------
def embedding_prepack(w):
    n, d = w.shape
    vmem_limit = _vmem_limit_bytes()
    # Per-row bytes: 2 buffers x (f32 in + u8 out + 8B scale/bias) + ~3 f32 temps.
    tn = _row_tile(n, 22 * d + 16, vmem_limit)
    grid = (pl.cdiv(n, tn),)
    return pl.pallas_call(
        _prepack_kernel,
        out_shape=(
            jax.ShapeDtypeStruct((n, d), jnp.uint8),
            jax.ShapeDtypeStruct((n, 2), jnp.float32),
        ),
        grid=grid,
        in_specs=[pl.BlockSpec((tn, d), lambda i: (i, 0))],
        out_specs=(
            pl.BlockSpec((tn, d), lambda i: (i, 0)),
            pl.BlockSpec((tn, 2), lambda i: (i, 0)),
        ),
        compiler_params=pltpu.CompilerParams(
            dimension_semantics=("parallel",),
            vmem_limit_bytes=vmem_limit,
        ),
    )(w)


def embedding_unpack(q, scale_bias):
    n, d = q.shape
    vmem_limit = _vmem_limit_bytes()
    # Per-row bytes: 2 buffers x (u8 in + 8B scale/bias + f32 out) + ~2 f32 temps.
    tn = _row_tile(n, 18 * d + 16, vmem_limit)
    grid = (pl.cdiv(n, tn),)
    return pl.pallas_call(
        _unpack_kernel,
        out_shape=jax.ShapeDtypeStruct((n, d), jnp.float32),
        grid=grid,
        in_specs=[
            pl.BlockSpec((tn, d), lambda i: (i, 0)),
            pl.BlockSpec((tn, 2), lambda i: (i, 0)),
        ],
        out_specs=pl.BlockSpec((tn, d), lambda i: (i, 0)),
        compiler_params=pltpu.CompilerParams(
            dimension_semantics=("parallel",),
            vmem_limit_bytes=vmem_limit,
        ),
    )(q, scale_bias)


class EmbeddingPackedParams:
    """JAX/Pallas mirror of torch.ao.nn.quantized EmbeddingPackedParams (quint8)."""

    def __init__(self, num_embeddings, embedding_dim, weight_fp32):
        self.num_embeddings = num_embeddings
        self.embedding_dim = embedding_dim
        # TODO(synk): quint4x2 (4-bit packed) prepack variant not implemented; quint8 only.
        self.set_weight(weight_fp32)

    def set_weight(self, weight_fp32):
        # packed = (uint8 rows, per-row [scale, bias] as (N, 2) float32)
        self._packed_weight = embedding_prepack(weight_fp32)

    def _weight(self):
        return embedding_unpack(*self._packed_weight)

    def forward(self, x):
        # PyTorch's forward is a pure pass-through: no kernel launched.
        return x

    __call__ = forward


# ----------------------------------------------------------------------------
# Main
# ----------------------------------------------------------------------------
if __name__ == "__main__":
    NUM_EMBEDDINGS = 16
    EMBEDDING_DIM = 128

    key = jax.random.PRNGKey(0)
    kw, kx = jax.random.split(key)
    weight = jax.random.normal(kw, (NUM_EMBEDDINGS, EMBEDDING_DIM), dtype=jnp.float32)
    x = jax.random.normal(kx, (8, EMBEDDING_DIM), dtype=jnp.float32)

    mod = EmbeddingPackedParams(NUM_EMBEDDINGS, EMBEDDING_DIM, weight)

    # forward: identity pass-through (no kernel).
    y = jax.block_until_ready(mod(x))
    assert y.shape == x.shape and y.dtype == x.dtype
    assert bool(jnp.all(y == x)), "forward must be exact identity"

    # _weight(): prepack -> unpack round trip (within per-row quantization step).
    q, scale_bias = jax.block_until_ready(mod._packed_weight)
    w_deq = jax.block_until_ready(mod._weight())
    assert q.shape == (NUM_EMBEDDINGS, EMBEDDING_DIM) and q.dtype == jnp.uint8
    per_row_scale = scale_bias[:, 0:1]
    max_err = float(jnp.max(jnp.abs(w_deq - weight)))
    tol = float(jnp.max(per_row_scale)) + 1e-6
    assert max_err <= tol, f"dequant error {max_err} > tolerance {tol}"

    print("KERNEL_OK")
</pallas_src>

<mosaic_0001>
module attributes {stable_mosaic.version = 11 : i64} {
  func.func @_prepack_kernel(%arg0: i32, %arg1: memref<16x128xf32, #tpu.memory_space<vmem>>, %arg2: memref<16x128xi8, #tpu.memory_space<vmem>>, %arg3: memref<16x2xf32, #tpu.memory_space<vmem>>) attributes {dimension_semantics = [#tpu.dimension_semantics<parallel>], iteration_bounds = array<i64: 1>, scalar_prefetch = 0 : i64, scratch_operands = 0 : i64, tpu.core_type = #tpu.core_type<tc>, window_params = [{transform_indices = @transform_0, window_bounds = array<i64: 16, 128>}, {transform_indices = @transform_1, window_bounds = array<i64: 16, 128>}, {transform_indices = @transform_2, window_bounds = array<i64: 16, 2>}]} {
    %c0 = arith.constant 0 : index
    %c0_0 = arith.constant 0 : index
    %0 = vector.load %arg1[%c0, %c0_0] : memref<16x128xf32, #tpu.memory_space<vmem>>, vector<16x128xf32>
    %cst = arith.constant dense<0x7F800000> : vector<16xf32>
    %1 = vector.multi_reduction <minimumf>, %0, %cst [1] : vector<16x128xf32> to vector<16xf32>
    %2 = vector.shape_cast %1 : vector<16xf32> to vector<16x1xf32>
    %cst_1 = arith.constant dense<0xFF800000> : vector<16xf32>
    %3 = vector.multi_reduction <maximumf>, %0, %cst_1 [1] : vector<16x128xf32> to vector<16xf32>
    %4 = vector.shape_cast %3 : vector<16xf32> to vector<16x1xf32>
    %5 = arith.subf %4, %2 : vector<16x1xf32>
    %cst_2 = arith.constant 0.00392156886 : f32
    %6 = vector.broadcast %cst_2 : f32 to vector<16x1xf32>
    %7 = arith.mulf %5, %6 : vector<16x1xf32>
    %cst_3 = arith.constant 9.99999993E-9 : f32
    %8 = vector.broadcast %cst_3 : f32 to vector<16x1xf32>
    %9 = arith.addf %5, %8 : vector<16x1xf32>
    %cst_4 = arith.constant 2.550000e+02 : f32
    %10 = vector.broadcast %cst_4 : f32 to vector<16x1xf32>
    %11 = arith.divf %10, %9 : vector<16x1xf32>
    %12 = vector.broadcast %2 : vector<16x1xf32> to vector<16x128xf32>
    %13 = arith.subf %0, %12 : vector<16x128xf32>
    %14 = vector.broadcast %11 : vector<16x1xf32> to vector<16x128xf32>
    %15 = arith.mulf %13, %14 : vector<16x128xf32>
    %16 = math.roundeven %15 : vector<16x128xf32>
    %cst_5 = arith.constant 0.000000e+00 : f32
    %cst_6 = arith.constant 2.550000e+02 : f32
    %17 = vector.broadcast %cst_5 : f32 to vector<16x128xf32>
    %18 = arith.maximumf %17, %16 : vector<16x128xf32>
    %19 = vector.broadcast %cst_6 : f32 to vector<16x128xf32>
    %20 = arith.minimumf %19, %18 : vector<16x128xf32>
    %21 = arith.fptoui %20 : vector<16x128xf32> to vector<16x128xi8>
    %c0_7 = arith.constant 0 : index
    %c0_8 = arith.constant 0 : index
    %22 = vector.load %arg2[%c0_7, %c0_8] : memref<16x128xi8, #tpu.memory_space<vmem>>, vector<16x128xi8>
    tpu.vector_store %arg2[%c0_7, %c0_8], %21 {strides = array<i32>} : memref<16x128xi8, #tpu.memory_space<vmem>>, vector<16x128xi8>,
    %c0_9 = arith.constant 0 : index
    %c0_10 = arith.constant 0 : index
    %23 = vector.load %arg3[%c0_9, %c0_10] : memref<16x2xf32, #tpu.memory_space<vmem>>, vector<16x1xf32>
    tpu.vector_store %arg3[%c0_9, %c0_10], %7 {strides = array<i32>} : memref<16x2xf32, #tpu.memory_space<vmem>>, vector<16x1xf32>,
    %c0_11 = arith.constant 0 : index
    %c1 = arith.constant 1 : index
    %24 = vector.load %arg3[%c0_11, %c1] : memref<16x2xf32, #tpu.memory_space<vmem>>, vector<16x1xf32>
    tpu.vector_store %arg3[%c0_11, %c1], %2 {strides = array<i32>} : memref<16x2xf32, #tpu.memory_space<vmem>>, vector<16x1xf32>,
    return
  }
  func.func @transform_0(%arg0: i32) -> (i32, i32) {
    %c0_i32 = arith.constant 0 : i32
    %c0_i32_0 = arith.constant 0 : i32
    return %arg0, %c0_i32 : i32, i32
  }
  func.func @transform_1(%arg0: i32) -> (i32, i32) {
    %c0_i32 = arith.constant 0 : i32
    %c0_i32_0 = arith.constant 0 : i32
    return %arg0, %c0_i32 : i32, i32
  }
  func.func @transform_2(%arg0: i32) -> (i32, i32) {
    %c0_i32 = arith.constant 0 : i32
    %c0_i32_0 = arith.constant 0 : i32
    return %arg0, %c0_i32 : i32, i32
  }
}

</mosaic_0001>

<bundles_post_ra>
// kernel: tpu_custom_call.1
= control target key start
LH: loop header
LB: loop body
LE: loop exit
PB: predicated region body
PF: predicated region fallthrough
CT: control target
= control target key end

     0   :  { %8 = vsyncpa [#allocation3], 0  ;;  %s215_s0 = inlined_call_operand.hbm [shape: f32[16,128], index: 0, kind: input, shape index: {}]   ;;  %s216_s1 = inlined_call_operand.hbm [shape: u8[16,128], index: 1, kind: output, shape index: {0}]   ;;  %s217_s2 = inlined_call_operand.vmem [shape: f32[16,2], index: 2, kind: output, shape index: {1}]  }
   0x1   :  { %9 = vsyncpa [#allocation4], 0  ;;  %s158_s9 = smov [#allocation2]   ;;  %s110_s13 = scalar_lea.hbm %s215_s0, 256 }
   0x2   :  { %s15_s10 = sshll.u32 %s158_s9, 4  ;;  %p111_p0 = scmp.ne.s32.totalorder %s215_s0, %s110_s13  ;;  %s16_s10 = int_to_ptr.vmem [resolvable:$true] %s15_s10 }
   0x3   :  { %p114_p1 = scmp.lt.u32.totalorder %s110_s13, %s215_s0 }
   0x5   :  { %p116_p2 = pnand %p114_p1, %p111_p0 }
   0x7   :  { %119 = shalt.err (!%p116_p2)
}
   0x8   :  { %s120_s18 = scalar_lea.vmem %s16_s10, 256  ;;  %p125_p4 = scmp.lt.s32.totalorder %s16_s10, %s16_s10 }
   0x9   :  { %p121_p3 = scmp.ne.s32.totalorder %s16_s10, %s120_s18  ;;  %p126_p5 = scmp.lt.s32.totalorder %s120_s18, %s120_s18 }
   0xb   :  { %p127_p6 = por %p126_p5, %p125_p4 }
   0xd   :  { %p128_p7 = pnand %p127_p6, %p121_p3 }
   0xf   :  { %131 = shalt.err (!%p128_p7)
}
  0x10   :  { %s159_s19 = smov 128   ;;  %s160_s20 = smov 8  }
  0x11   :  { %21 = dma.hbm_to_vmem [thread:$0]  %s215_s0, 256, %s16_s10, [#allocation3], %s159_s19, %s159_s19, %s160_s20  }
  0x12   :  { %154 = dma.done.wait [#allocation3], 256  }
  0x13   :  { %155 = vsyncadd [#allocation3], 4294967040  ;;  %v25_v0 = vld [vmem:[#allocation2] sm:$0xff]  ;;  %v26_v1 = vld [vmem:[#allocation2 + $0x8] sm:$0xff]  ;;  %vm71_vm0 = vcmask 7168   ;;  %vm74_vm1 = vcmask 15368  }
  0x14   :  { %31 = vmax.xlane.f32.xlu1 %v25_v0  ;;  %27 = vmin.xlane.f32.xlu0 %v25_v0 }
  0x18   :  { %33 = vmax.xlane.f32.xlu1 %v26_v1  ;;  %29 = vmin.xlane.f32.xlu0 %v26_v1 }
  0xa1   :  { %v32_v2 = vpop.xlane.xlu1 %31  ;;  %v28_v3 = vpop.xlane.xlu0 %27 }
  0xa2   :  { %v35_v4 = vsub.f32 %v32_v2, %v28_v3  ;;  %v45_v14 = vsub.f32 %v25_v0, %v28_v3 }
  0xa4   :  { %v37_v5 = vmul.f32 0.003921569, %v35_v4  ;;  %v39_v6 = vadd.f32 1e-08, %v35_v4 }
  0xa5   :  { %v34_v7 = vpop.xlane.xlu1 %33  ;;  %v30_v8 = vpop.xlane.xlu0 %29 }
  0xa6   :  { %106 = vrcp.f32 %v39_v6  ;;  %72 = vst.msk [vmem:[%s217_s2] sm:$0xff] %vm71_vm0, %v37_v5  ;;  %v36_v9 = vsub.f32 %v34_v7, %v30_v8  ;;  %v46_v19 = vsub.f32 %v26_v1, %v30_v8 }
  0xa7   :  { %75 = vst.msk [vmem:[%s217_s2] sm:$0xff] %vm74_vm1, %v28_v3 }
  0xa8   :  { %v38_v10 = vmul.f32 0.003921569, %v36_v9  ;;  %v40_v11 = vadd.f32 1e-08, %v36_v9 }
  0xaa   :  { %108 = vrcp.f32 %v40_v11  ;;  %73 = vst.msk [vmem:[%s217_s2 + $0x8] sm:$0xff] %vm71_vm0, %v38_v10 }
  0xab   :  { %76 = vst.msk [vmem:[%s217_s2 + $0x8] sm:$0xff] %vm74_vm1, %v30_v8  ;;  %s161_s2 = smov [#allocation5]  }
  0xac   :  { %s82_s30 = sshll.u32 %s161_s2, 4  ;;  %s83_s30 = int_to_ptr.vmem [resolvable:$true] %s82_s30 }
  0xad   :  { %s132_s3 = scalar_lea.vmem %s83_s30, 64  ;;  %p137_p9 = scmp.lt.s32.totalorder %s83_s30, %s83_s30 }
  0xae   :  { %p133_p8 = scmp.ne.s32.totalorder %s83_s30, %s132_s3  ;;  %p138_p10 = scmp.lt.s32.totalorder %s132_s3, %s132_s3 }
  0xb0   :  { %v107_v12 = vpop.eup %106  ;;  %p139_p11 = por %p138_p10, %p137_p9 }
  0xb1   :  { %v42_v13 = vmul.f32 255.0, %v107_v12 }
  0xb2   :  { %p140_p12 = pnand %p139_p11, %p133_p8 }
  0xb3   :  { %v47_v15 = vmul.f32 %v45_v14, %v42_v13 }
  0xb4   :  { %v109_v16 = vpop.eup %108 }
  0xb5   :  { %v98_v17 = vround.rtne.f32 %v47_v15  ;;  %v44_v18 = vmul.f32 255.0, %v109_v16 }
  0xb7   :  { %v51_v20 = vmax.f32 %v98_v17, 0.0  ;;  %v48_v21 = vmul.f32 %v46_v19, %v44_v18 }
  0xb9   :  { %v99_v22 = vround.rtne.f32 %v48_v21  ;;  %v53_v23 = vmin.f32 %v51_v20, 255.0 }
  0xbb   :  { %v52_v24 = vmax.f32 %v99_v22, 0.0  ;;  %v55_v26 = vtrunc.f32 %v53_v23 }
  0xbd   :  { %v54_v25 = vmin.f32 %v52_v24, 255.0 }
  0xbf   :  { %v56_v27 = vtrunc.f32 %v54_v25 }
  0xc1   :  { %v57_v28 = vpack.c.f32.eXmY %v55_v26, %v56_v27, 56 }
  0xc3   :  { %v61_v29 = vpack.c.b8 %v57_v28, %v57_v28 }
  0xc5   :  { %v63_v30 = vunpack.c.0.s8 %v61_v29  ;;  %v64_v31 = vunpack.c.1.s8 %v61_v29 }
  0xc7   :  { %v65_v32 = vpack.c.b16 %v63_v30, %v63_v30  ;;  %v67_v33 = vpack.c.b16 %v64_v31, %v64_v31 }
  0xc9   :  { %v66_v34 = vpack.c.b8 %v65_v32, %v65_v32  ;;  %v68_v35 = vpack.c.b8 %v67_v33, %v67_v33 }
  0xcb   :  { %69 = vst [vmem:[#allocation5] sm:$0x3] %v66_v34  ;;  %70 = vst [vmem:[#allocation5 + $0x2] sm:$0x3] %v68_v35 }
  0xcc   :  { %143 = shalt.err (!%p140_p12)
}
  0xcd   :  { %s144_s6 = scalar_lea.hbm %s216_s1, 64 }
  0xce   :  { %p145_p13 = scmp.ne.s32.totalorder %s216_s1, %s144_s6  ;;  %p148_p0 = scmp.lt.u32.totalorder %s144_s6, %s216_s1 }
  0xd0   :  { %p150_p1 = pnand %p148_p0, %p145_p13 }
  0xd2   :  { %153 = shalt.err (!%p150_p1)
}
  0xd3   :  { %s162_s11 = smov 32   ;;  %s163_s12 = smov 2  }
  0xd4   :  { %88 = dma.vmem_to_hbm [thread:$0]  %s83_s30, 64, %s216_s1, [#allocation4], %s162_s11, %s162_s11, %s163_s12  }
  0xd5   :  { %156 = dma.done.wait [#allocation4], 64  }
  0xd6   :  { %157 = vsyncadd [#allocation4], 4294967232 }
  0xd7   :  { %96 = vsyncpa [#allocation3], 1 }
  0xd8   :  { %97 = vsyncpa [#allocation4], 1 }

</bundles_post_ra>
